<compile_context>
chip_gen: v7x
topology: tpu7x:2x2x1
jax: 0.10.0
libtpu: 0.0.40
codegen_flags: <defaults>
</compile_context>

<pallas_src>
import jax
import jax.numpy as jnp
from jax.experimental import pallas as pl
from jax.experimental.pallas import tpu as pltpu

K_IN = 28 * 28      # 784 (full last dim of x, used unpadded)
H1 = 256
H2 = 128
OUT = 10
OUT_PAD = 128       # lane-dense output width (cols 10..127 are zero weights/bias)


def _round_up(n, m):
    return ((n + m - 1) // m) * m


def _cdiv(a, b):
    return (a + b - 1) // b


def _choose_tm(B):
    """Batch tile: multiple of 16, <= ~1024 rows, minimal padding waste, and >= 2
    grid steps for large batches (v7x has two TensorCores)."""
    b16 = _round_up(max(B, 16), 16)
    if b16 <= 512:
        return b16                       # single tile, zero/near-zero padding
    n_steps = max(2, _cdiv(b16, 1024))   # cap tile at ~1024 rows
    return _round_up(_cdiv(b16, n_steps), 16)


def _mlp_kernel(x_ref, w1_ref, b1_ref, w2_ref, b2_ref, w3_ref, b3_ref, o_ref):
    # fc1 + ReLU : bf16 MXU operands, f32 accumulate, f32 bias/ReLU on the VPU.
    h1 = jnp.dot(x_ref[...], w1_ref[...], preferred_element_type=jnp.float32)
    h1 = jnp.maximum(h1 + b1_ref[...], 0.0)
    # fc2 + ReLU
    h2 = jnp.dot(h1.astype(jnp.bfloat16), w2_ref[...],
                 preferred_element_type=jnp.float32)
    h2 = jnp.maximum(h2 + b2_ref[...], 0.0)
    # fc3 (output lane-padded to 128; columns >= 10 have zero weights/bias).
    h3 = jnp.dot(h2.astype(jnp.bfloat16), w3_ref[...],
                 preferred_element_type=jnp.float32)
    # f32 accumulation; single bf16 rounding at the store.
    o_ref[...] = (h3 + b3_ref[...]).astype(o_ref.dtype)


def simple_nn_forward(x, kparams):
    """x: (B, 784), ideally already bf16.  kparams: padded bf16/f32 params from
    prepare_params.  Returns bf16 logits of shape (B, 10)."""
    B = x.shape[0]
    if x.dtype != jnp.bfloat16:
        # Fallback cast; in production the producer should emit bf16 directly.
        x = x.astype(jnp.bfloat16)

    tm = _choose_tm(B)
    B_pad = _round_up(B, tm)
    if B_pad != B:
        x = jnp.pad(x, ((0, B_pad - B), (0, 0)))
    num_steps = B_pad // tm

    # Triple-buffer the streamed activation tile only when it can actually help.
    if num_steps >= 3:
        x_spec = pl.BlockSpec((tm, K_IN), lambda i: (i, 0),
                              pipeline_mode=pl.Buffered(3))
    else:
        x_spec = pl.BlockSpec((tm, K_IN), lambda i: (i, 0))

    weight_bytes = (2 * (K_IN * H1 + H1 * H2 + H2 * OUT_PAD)
                    + 4 * (H1 + H2 + OUT_PAD))
    cost = pl.CostEstimate(
        flops=2 * B_pad * (K_IN * H1 + H1 * H2 + H2 * OUT_PAD),
        transcendentals=0,
        bytes_accessed=2 * B_pad * K_IN + 2 * B_pad * OUT_PAD + weight_bytes,
    )

    out = pl.pallas_call(
        _mlp_kernel,
        out_shape=jax.ShapeDtypeStruct((B_pad, OUT_PAD), jnp.bfloat16),
        grid_spec=pltpu.PrefetchScalarGridSpec(
            num_scalar_prefetch=0,
            grid=(num_steps,),
            in_specs=[
                # streamed activation tile
                x_spec,
                # weights / biases: constant index_map -> VMEM-resident across steps
                pl.BlockSpec((K_IN, H1), lambda i: (0, 0)),
                pl.BlockSpec((1, H1), lambda i: (0, 0)),
                pl.BlockSpec((H1, H2), lambda i: (0, 0)),
                pl.BlockSpec((1, H2), lambda i: (0, 0)),
                pl.BlockSpec((H2, OUT_PAD), lambda i: (0, 0)),
                pl.BlockSpec((1, OUT_PAD), lambda i: (0, 0)),
            ],
            out_specs=pl.BlockSpec((tm, OUT_PAD), lambda i: (i, 0)),
        ),
        compiler_params=pltpu.CompilerParams(
            dimension_semantics=("parallel",),
        ),
        cost_estimate=cost,
    )(x, kparams["w1"], kparams["b1"], kparams["w2"], kparams["b2"],
      kparams["w3"], kparams["b3"])

    # Drop batch padding and the lane padding on the output (stays bf16).
    return out[:B, :OUT]


def init_params(key):
    """f32, PyTorch-layout-equivalent params (W stored (in, out) so y = x @ W + b)."""
    ks = jax.random.split(key, 6)

    def linear(kw, kb, fan_in, fan_out):
        bound = 1.0 / jnp.sqrt(jnp.float32(fan_in))
        w = jax.random.uniform(kw, (fan_in, fan_out), jnp.float32, -bound, bound)
        b = jax.random.uniform(kb, (1, fan_out), jnp.float32, -bound, bound)
        return w, b

    w1, b1 = linear(ks[0], ks[1], K_IN, H1)
    w2, b2 = linear(ks[2], ks[3], H1, H2)
    w3, b3 = linear(ks[4], ks[5], H2, OUT)
    return {"w1": w1, "b1": b1, "w2": w2, "b2": b2, "w3": w3, "b3": b3}


def prepare_params(p):
    """Cast matmul operands to bf16; lane-pad only the output layer to 128."""
    w1 = p["w1"].astype(jnp.bfloat16)                                     # (784, 256)
    w2 = p["w2"].astype(jnp.bfloat16)                                     # (256, 128)
    w3 = jnp.pad(p["w3"], ((0, 0), (0, OUT_PAD - OUT))).astype(jnp.bfloat16)  # (128, 128)
    b1 = p["b1"].astype(jnp.float32)
    b2 = p["b2"].astype(jnp.float32)
    b3 = jnp.pad(p["b3"], ((0, 0), (0, OUT_PAD - OUT))).astype(jnp.float32)
    return {"w1": w1, "b1": b1, "w2": w2, "b2": b2, "w3": w3, "b3": b3}


if __name__ == "__main__":
    key = jax.random.PRNGKey(0)
    k_params, k_x = jax.random.split(key)

    params = init_params(k_params)          # f32 reference weights
    kparams = prepare_params(params)        # bf16 kernel weights (w3/b3 lane-padded)

    # Small MNIST-like batch: (B, 1, 28, 28) -> view(-1, 784); producer emits bf16.
    B = 8
    x_img = jax.random.normal(k_x, (B, 1, 28, 28), jnp.float32)
    x = x_img.reshape(-1, K_IN).astype(jnp.bfloat16)

    out = simple_nn_forward(x, kparams)
    out = jax.block_until_ready(out)

    # Reference in plain JAX with the same bf16-operand / f32-accumulate numerics.
    def ref(xb, p):
        h = jnp.dot(xb.astype(jnp.bfloat16), p["w1"].astype(jnp.bfloat16),
                    preferred_element_type=jnp.float32) + p["b1"]
        h = jnp.maximum(h, 0.0)
        h = jnp.dot(h.astype(jnp.bfloat16), p["w2"].astype(jnp.bfloat16),
                    preferred_element_type=jnp.float32) + p["b2"]
        h = jnp.maximum(h, 0.0)
        return jnp.dot(h.astype(jnp.bfloat16), p["w3"].astype(jnp.bfloat16),
                       preferred_element_type=jnp.float32) + p["b3"]

    ref_out = ref(x, params)
    assert out.shape == (B, OUT)
    assert out.dtype == jnp.bfloat16
    # Output carries one extra bf16 rounding vs. the f32 reference -> 2e-2 tolerance.
    assert jnp.allclose(out.astype(jnp.float32), ref_out, atol=2e-2, rtol=2e-2), (
        float(jnp.max(jnp.abs(out.astype(jnp.float32) - ref_out))))

    print("KERNEL_OK")
</pallas_src>

<mosaic_0001>
module attributes {stable_mosaic.version = 11 : i64} {
  func.func @_mlp_kernel(%arg0: i32, %arg1: memref<16x784xbf16, #tpu.memory_space<vmem>>, %arg2: memref<784x256xbf16, #tpu.memory_space<vmem>>, %arg3: memref<1x256xf32, #tpu.memory_space<vmem>>, %arg4: memref<256x128xbf16, #tpu.memory_space<vmem>>, %arg5: memref<1x128xf32, #tpu.memory_space<vmem>>, %arg6: memref<128x128xbf16, #tpu.memory_space<vmem>>, %arg7: memref<1x128xf32, #tpu.memory_space<vmem>>, %arg8: memref<16x128xbf16, #tpu.memory_space<vmem>>) attributes {dimension_semantics = [#tpu.dimension_semantics<parallel>], iteration_bounds = array<i64: 1>, scalar_prefetch = 0 : i64, scratch_operands = 0 : i64, tpu.core_type = #tpu.core_type<tc>, window_params = [{transform_indices = @transform_0, window_bounds = array<i64: 16, 784>}, {pipeline_mode = #tpu.pipeline_mode<synchronous>, transform_indices = @transform_1, window_bounds = array<i64: 784, 256>}, {pipeline_mode = #tpu.pipeline_mode<synchronous>, transform_indices = @transform_2, window_bounds = array<i64: 1, 256>}, {pipeline_mode = #tpu.pipeline_mode<synchronous>, transform_indices = @transform_3, window_bounds = array<i64: 256, 128>}, {pipeline_mode = #tpu.pipeline_mode<synchronous>, transform_indices = @transform_4, window_bounds = array<i64: 1, 128>}, {pipeline_mode = #tpu.pipeline_mode<synchronous>, transform_indices = @transform_5, window_bounds = array<i64: 128, 128>}, {pipeline_mode = #tpu.pipeline_mode<synchronous>, transform_indices = @transform_6, window_bounds = array<i64: 1, 128>}, {transform_indices = @transform_7, window_bounds = array<i64: 16, 128>}]} {
    %c0 = arith.constant 0 : index
    %c0_0 = arith.constant 0 : index
    %0 = vector.load %arg1[%c0, %c0_0] : memref<16x784xbf16, #tpu.memory_space<vmem>>, vector<16x784xbf16>
    %c0_1 = arith.constant 0 : index
    %c0_2 = arith.constant 0 : index
    %1 = vector.load %arg2[%c0_1, %c0_2] : memref<784x256xbf16, #tpu.memory_space<vmem>>, vector<784x256xbf16>
    %cst = arith.constant dense<0.000000e+00> : vector<16x256xf32>
    %2 = tpu.matmul %0, %1, %cst {dimension_numbers = #tpu.dot_dimension_numbers<[1], [0], [0], [1], [0, 0, 1, 1], [], []>} : vector<16x784xbf16>, vector<784x256xbf16>, vector<16x256xf32> -> vector<16x256xf32>
    %c0_3 = arith.constant 0 : index
    %c0_4 = arith.constant 0 : index
    %3 = vector.load %arg3[%c0_3, %c0_4] : memref<1x256xf32, #tpu.memory_space<vmem>>, vector<1x256xf32>
    %4 = vector.broadcast %3 : vector<1x256xf32> to vector<16x256xf32>
    %5 = arith.addf %2, %4 : vector<16x256xf32>
    %cst_5 = arith.constant 0.000000e+00 : f32
    %6 = vector.broadcast %cst_5 : f32 to vector<16x256xf32>
    %7 = arith.maximumf %5, %6 : vector<16x256xf32>
    %8 = arith.truncf %7 : vector<16x256xf32> to vector<16x256xbf16>
    %c0_6 = arith.constant 0 : index
    %c0_7 = arith.constant 0 : index
    %9 = vector.load %arg4[%c0_6, %c0_7] : memref<256x128xbf16, #tpu.memory_space<vmem>>, vector<256x128xbf16>
    %cst_8 = arith.constant dense<0.000000e+00> : vector<16x128xf32>
    %10 = tpu.matmul %8, %9, %cst_8 {dimension_numbers = #tpu.dot_dimension_numbers<[1], [0], [0], [1], [0, 0, 1, 1], [], []>} : vector<16x256xbf16>, vector<256x128xbf16>, vector<16x128xf32> -> vector<16x128xf32>
    %c0_9 = arith.constant 0 : index
    %c0_10 = arith.constant 0 : index
    %11 = vector.load %arg5[%c0_9, %c0_10] : memref<1x128xf32, #tpu.memory_space<vmem>>, vector<1x128xf32>
    %12 = vector.broadcast %11 : vector<1x128xf32> to vector<16x128xf32>
    %13 = arith.addf %10, %12 : vector<16x128xf32>
    %cst_11 = arith.constant 0.000000e+00 : f32
    %14 = vector.broadcast %cst_11 : f32 to vector<16x128xf32>
    %15 = arith.maximumf %13, %14 : vector<16x128xf32>
    %16 = arith.truncf %15 : vector<16x128xf32> to vector<16x128xbf16>
    %c0_12 = arith.constant 0 : index
    %c0_13 = arith.constant 0 : index
    %17 = vector.load %arg6[%c0_12, %c0_13] : memref<128x128xbf16, #tpu.memory_space<vmem>>, vector<128x128xbf16>
    %cst_14 = arith.constant dense<0.000000e+00> : vector<16x128xf32>
    %18 = tpu.matmul %16, %17, %cst_14 {dimension_numbers = #tpu.dot_dimension_numbers<[1], [0], [0], [1], [0, 0, 1, 1], [], []>} : vector<16x128xbf16>, vector<128x128xbf16>, vector<16x128xf32> -> vector<16x128xf32>
    %c0_15 = arith.constant 0 : index
    %c0_16 = arith.constant 0 : index
    %19 = vector.load %arg7[%c0_15, %c0_16] : memref<1x128xf32, #tpu.memory_space<vmem>>, vector<1x128xf32>
    %20 = vector.broadcast %19 : vector<1x128xf32> to vector<16x128xf32>
    %21 = arith.addf %18, %20 : vector<16x128xf32>
    %22 = arith.truncf %21 : vector<16x128xf32> to vector<16x128xbf16>
    %c0_17 = arith.constant 0 : index
    %c0_18 = arith.constant 0 : index
    %23 = vector.load %arg8[%c0_17, %c0_18] : memref<16x128xbf16, #tpu.memory_space<vmem>>, vector<16x128xbf16>
    tpu.vector_store %arg8[%c0_17, %c0_18], %22 {strides = array<i32>} : memref<16x128xbf16, #tpu.memory_space<vmem>>, vector<16x128xbf16>,
    return
  }
  func.func @transform_0(%arg0: i32) -> (i32, i32) {
    %c0_i32 = arith.constant 0 : i32
    %c0_i32_0 = arith.constant 0 : i32
    return %arg0, %c0_i32 : i32, i32
  }
  func.func @transform_1(%arg0: i32) -> (i32, i32) {
    %c0_i32 = arith.constant 0 : i32
    %c0_i32_0 = arith.constant 0 : i32
    %c0_i32_1 = arith.constant 0 : i32
    return %c0_i32, %c0_i32_0 : i32, i32
  }
  func.func @transform_2(%arg0: i32) -> (i32, i32) {
    %c0_i32 = arith.constant 0 : i32
    %c0_i32_0 = arith.constant 0 : i32
    %c0_i32_1 = arith.constant 0 : i32
    return %c0_i32, %c0_i32_0 : i32, i32
  }
  func.func @transform_3(%arg0: i32) -> (i32, i32) {
    %c0_i32 = arith.constant 0 : i32
    %c0_i32_0 = arith.constant 0 : i32
    %c0_i32_1 = arith.constant 0 : i32
    return %c0_i32, %c0_i32_0 : i32, i32
  }
  func.func @transform_4(%arg0: i32) -> (i32, i32) {
    %c0_i32 = arith.constant 0 : i32
    %c0_i32_0 = arith.constant 0 : i32
    %c0_i32_1 = arith.constant 0 : i32
    return %c0_i32, %c0_i32_0 : i32, i32
  }
  func.func @transform_5(%arg0: i32) -> (i32, i32) {
    %c0_i32 = arith.constant 0 : i32
    %c0_i32_0 = arith.constant 0 : i32
    %c0_i32_1 = arith.constant 0 : i32
    return %c0_i32, %c0_i32_0 : i32, i32
  }
  func.func @transform_6(%arg0: i32) -> (i32, i32) {
    %c0_i32 = arith.constant 0 : i32
    %c0_i32_0 = arith.constant 0 : i32
    %c0_i32_1 = arith.constant 0 : i32
    return %c0_i32, %c0_i32_0 : i32, i32
  }
  func.func @transform_7(%arg0: i32) -> (i32, i32) {
    %c0_i32 = arith.constant 0 : i32
    %c0_i32_0 = arith.constant 0 : i32
    return %arg0, %c0_i32 : i32, i32
  }
}

</mosaic_0001>

<bundles_post_ra>
// kernel: tpu_custom_call.1
= control target key start
LH: loop header
LB: loop body
LE: loop exit
PB: predicated region body
PF: predicated region fallthrough
CT: control target
= control target key end

     0   :  { %12 = vsyncpa [#allocation3], 0  ;;  %s1881_s0 = inlined_call_operand.hbm [shape: bf16[16,784], index: 0, kind: input, shape index: {}]   ;;  %s1882_s1 = inlined_call_operand.hbm [shape: bf16[784,256], index: 1, kind: input, shape index: {}]   ;;  %s1883_s2 = inlined_call_operand.vmem [shape: f32[1,256], index: 2, kind: input, shape index: {}]   ;;  %s1884_s3 = inlined_call_operand.hbm [shape: bf16[256,128], index: 3, kind: input, shape index: {}]   ;;  %s1885_s4 = inlined_call_operand.vmem [shape: f32[1,128], index: 4, kind: input, shape index: {}]   ;;  %s1886_s5 = inlined_call_operand.hbm [shape: bf16[128,128], index: 5, kind: input, shape index: {}]   ;;  %s1887_s6 = inlined_call_operand.vmem [shape: f32[1,128], index: 6, kind: input, shape index: {}]   ;;  %s1888_s7 = inlined_call_operand.hbm [shape: bf16[16,128], index: 7, kind: output, shape index: {}]  }
   0x1   :  { %13 = vsyncpa [#allocation6], 0 }
   0x2   :  { %14 = vsyncpa [#allocation9], 0 }
   0x3   :  { %15 = vsyncpa [#allocation4], 0  ;;  %s1749_s24 = smov [#allocation5]   ;;  %s1631_s28 = scalar_lea.hbm %s1882_s1, 12544 }
   0x4   :  { %s33_s25 = sshll.u32 %s1749_s24, 4  ;;  %p1632_p0 = scmp.ne.s32.totalorder %s1882_s1, %s1631_s28  ;;  %s34_s25 = int_to_ptr.vmem [resolvable:$true] %s33_s25 }
   0x5   :  { %p1635_p1 = scmp.lt.u32.totalorder %s1631_s28, %s1882_s1 }
   0x7   :  { %p1637_p2 = pnand %p1635_p1, %p1632_p0 }
   0x9   :  { %1640 = shalt.err (!%p1637_p2)
}
   0xa   :  { %s1641_s10 = scalar_lea.vmem %s34_s25, 12544  ;;  %p1646_p4 = scmp.lt.s32.totalorder %s34_s25, %s34_s25 }
   0xb   :  { %p1642_p3 = scmp.ne.s32.totalorder %s34_s25, %s1641_s10  ;;  %p1647_p5 = scmp.lt.s32.totalorder %s1641_s10, %s1641_s10 }
   0xd   :  { %p1648_p6 = por %p1647_p5, %p1646_p4 }
   0xf   :  { %p1649_p7 = pnand %p1648_p6, %p1642_p3 }
  0x11   :  { %1652 = shalt.err (!%p1649_p7)
}
  0x12   :  { %s1750_s11 = smov 128   ;;  %s1751_s12 = smov 8  }
  0x13   :  { %39 = dma.hbm_to_vmem [thread:$0]  %s1882_s1, 12544, %s34_s25, [#allocation6], %s1750_s11, %s1750_s11, %s1751_s12  }
  0x14   :  { %s1752_s15 = smov [#allocation2]   ;;  %s1653_s19 = scalar_lea.hbm %s1881_s0, 896 }
  0x15   :  { %s21_s16 = sshll.u32 %s1752_s15, 4  ;;  %p1654_p8 = scmp.ne.s32.totalorder %s1881_s0, %s1653_s19  ;;  %s22_s16 = int_to_ptr.vmem [resolvable:$true] %s21_s16 }
  0x16   :  { %p1657_p9 = scmp.lt.u32.totalorder %s1653_s19, %s1881_s0 }
  0x18   :  { %p1659_p10 = pnand %p1657_p9, %p1654_p8 }
  0x1a   :  { %1662 = shalt.err (!%p1659_p10)
}
  0x1b   :  { %s1663_s24 = scalar_lea.vmem %s22_s16, 896  ;;  %p1668_p12 = scmp.lt.s32.totalorder %s22_s16, %s22_s16 }
  0x1c   :  { %p1664_p11 = scmp.ne.s32.totalorder %s22_s16, %s1663_s24  ;;  %p1669_p13 = scmp.lt.s32.totalorder %s1663_s24, %s1663_s24 }
  0x1e   :  { %p1670_p0 = por %p1669_p13, %p1668_p12 }
  0x20   :  { %p1671_p1 = pnand %p1670_p0, %p1664_p11 }
  0x22   :  { %1674 = shalt.err (!%p1671_p1)
}
  0x23   :  { %s1753_s1 = smov 448   ;;  %s1754_s25 = smov 28  }
  0x24   :  { %27 = dma.hbm_to_vmem [thread:$0]  %s1881_s0, 896, %s22_s16, [#allocation3], %s1753_s1, %s1753_s1, %s1754_s25  }
  0x25   :  { %s1755_s28 = smov [#allocation7]   ;;  %s1675_s9 = scalar_lea.hbm %s1884_s3, 2048 }
  0x26   :  { %s47_s29 = sshll.u32 %s1755_s28, 4  ;;  %p1676_p2 = scmp.ne.s32.totalorder %s1884_s3, %s1675_s9  ;;  %s48_s29 = int_to_ptr.vmem [resolvable:$true] %s47_s29 }
  0x27   :  { %p1679_p3 = scmp.lt.u32.totalorder %s1675_s9, %s1884_s3 }
  0x29   :  { %p1681_p4 = pnand %p1679_p3, %p1676_p2 }
  0x2b   :  { %1684 = shalt.err (!%p1681_p4)
}
  0x2c   :  { %s1685_s14 = scalar_lea.vmem %s48_s29, 2048  ;;  %p1690_p6 = scmp.lt.s32.totalorder %s48_s29, %s48_s29 }
  0x2d   :  { %p1686_p5 = scmp.ne.s32.totalorder %s48_s29, %s1685_s14  ;;  %p1691_p7 = scmp.lt.s32.totalorder %s1685_s14, %s1685_s14 }
  0x2f   :  { %p1692_p8 = por %p1691_p7, %p1690_p6 }
  0x31   :  { %p1693_p9 = pnand %p1692_p8, %p1686_p5 }
  0x33   :  { %1696 = shalt.err (!%p1693_p9)
}
  0x34   :  { %s1756_s0 = smov 64   ;;  %s1757_s15 = smov 4  }
  0x35   :  { %53 = dma.hbm_to_vmem [thread:$0]  %s1884_s3, 2048, %s48_s29, [#allocation6], %s1756_s0, %s1756_s0, %s1757_s15  }
  0x36   :  { %s1758_s18 = smov [#allocation8]   ;;  %s1697_s22 = scalar_lea.hbm %s1886_s5, 1024 }
  0x37   :  { %s61_s19 = sshll.u32 %s1758_s18, 4  ;;  %p1698_p10 = scmp.ne.s32.totalorder %s1886_s5, %s1697_s22  ;;  %s62_s19 = int_to_ptr.vmem [resolvable:$true] %s61_s19 }
  0x38   :  { %p1701_p11 = scmp.lt.u32.totalorder %s1697_s22, %s1886_s5 }
  0x3a   :  { %p1703_p12 = pnand %p1701_p11, %p1698_p10 }
  0x3c   :  { %1706 = shalt.err (!%p1703_p12)
}
  0x3d   :  { %s1707_s26 = scalar_lea.vmem %s62_s19, 1024  ;;  %p1712_p0 = scmp.lt.s32.totalorder %s62_s19, %s62_s19 }
  0x3e   :  { %p1708_p13 = scmp.ne.s32.totalorder %s62_s19, %s1707_s26  ;;  %p1713_p1 = scmp.lt.s32.totalorder %s1707_s26, %s1707_s26 }
  0x40   :  { %p1714_p2 = por %p1713_p1, %p1712_p0 }
  0x42   :  { %p1715_p3 = pnand %p1714_p2, %p1708_p13 }
  0x44   :  { %1718 = shalt.err (!%p1715_p3)
}
  0x45   :  { %67 = dma.hbm_to_vmem [thread:$0]  %s1886_s5, 1024, %s62_s19, [#allocation9], %s1756_s0, %s1756_s0, %s1757_s15  }
  0x46   :  { %1741 = dma.done.wait [#allocation3], 896  }
  0x47   :  { %1742 = vsyncadd [#allocation3], 4294966400 }
  0x48   :  { %1743 = dma.done.wait [#allocation6], 14592  }
  0x49   :  { %1744 = vsyncadd [#allocation6], 4294952704 }
  0x4a   :  { %1745 = dma.done.wait [#allocation9], 1024  }
  0x4b   :  { %1746 = vsyncadd [#allocation9], 4294966272  ;;  %v1450_v0 = vld [vmem:[#allocation5 + $0x104] ss:$8 sps:$4 sm:$0xff]   ;;  %v1452_v1 = vld [vmem:[#allocation5 + $0x100] ss:$8 sps:$4 sm:$0xff]  }
  0x4c   :  { %773 = vmatprep.subr.bf16.mxu0 %v1450_v0  ;;  %v1453_v2 = vld [vmem:[#allocation5 + $0x114] ss:$8 sps:$4 sm:$0xff]   ;;  %v1455_v3 = vld [vmem:[#allocation5 + $0x110] ss:$8 sps:$4 sm:$0xff]   ;;  %v1456_v4 = vld [vmem:[#allocation5 + $0x124] ss:$8 sps:$4 sm:$0xff]  }
  0x4d   :  { %774 = vmatpush1.bf16.msra.mxu0 %v1452_v1  ;;  %v1458_v5 = vld [vmem:[#allocation5 + $0x120] ss:$8 sps:$4 sm:$0xff]   ;;  %v1459_v6 = vld [vmem:[#allocation5 + $0x134] ss:$8 sps:$4 sm:$0xff]   ;;  %v1461_v7 = vld [vmem:[#allocation5 + $0x130] ss:$8 sps:$4 sm:$0xff]  }
  0x4e   :  { %775 = vmatprep.subr.bf16.mxu0 %v1453_v2  ;;  %v1462_v8 = vld [vmem:[#allocation5 + $0x144] ss:$8 sps:$4 sm:$0xff]   ;;  %v1464_v9 = vld [vmem:[#allocation5 + $0x140] ss:$8 sps:$4 sm:$0xff]   ;;  %v1465_v10 = vld [vmem:[#allocation5 + $0x154] ss:$8 sps:$4 sm:$0xff]  }
  0x4f   :  { %v1467_v11 = vld [vmem:[#allocation5 + $0x150] ss:$8 sps:$4 sm:$0xff]   ;;  %v1468_v12 = vld [vmem:[#allocation5 + $0x164] ss:$8 sps:$4 sm:$0xff]   ;;  %v1470_v14 = vld [vmem:[#allocation5 + $0x160] ss:$8 sps:$4 sm:$0xff]  }
  0x50   :  { %v1500_v13 = vld [vmem:[#allocation2 + $0xc] ss:$28 sps:$4 sm:$0xff]   ;;  %v1507_v16 = vld [vmem:[#allocation5 + $0x4] ss:$8 sps:$4 sm:$0xff]   ;;  %v1512_v19 = vld [vmem:[#allocation5] ss:$8 sps:$4 sm:$0xff]  }
  0x51   :  { %776 = vmatpush1.bf16.msra.mxu0 %v1455_v3  ;;  %v1471_v15 = vld [vmem:[#allocation5 + $0x174] ss:$8 sps:$4 sm:$0xff]   ;;  %805 = vmatprep.mubr.bf16.mxu0 %v1500_v13  ;;  %v1473_v17 = vld [vmem:[#allocation5 + $0x170] ss:$8 sps:$4 sm:$0xff]   ;;  %v1474_v18 = vld [vmem:[#allocation5 + $0x184] ss:$8 sps:$4 sm:$0xff]  }
  0x52   :  { %777 = vmatprep.subr.bf16.mxu0 %v1456_v4  ;;  %730 = vmatprep.subr.bf16.mxu1 %v1507_v16  ;;  %v1513_v20 = vld [vmem:[#allocation5 + $0x14] ss:$8 sps:$4 sm:$0xff]   ;;  %v1476_v21 = vld [vmem:[#allocation5 + $0x180] ss:$8 sps:$4 sm:$0xff]   ;;  %v1518_v22 = vld [vmem:[#allocation5 + $0x10] ss:$8 sps:$4 sm:$0xff]  }
  0x53   :  { %731 = vmatpush1.bf16.msra.mxu1 %v1512_v19  ;;  %v1519_v23 = vld [vmem:[#allocation5 + $0x24] ss:$8 sps:$4 sm:$0xff]   ;;  %v1477_v24 = vld [vmem:[#allocation5 + $0x194] ss:$8 sps:$4 sm:$0xff]   ;;  %v1524_v25 = vld [vmem:[#allocation5 + $0x20] ss:$8 sps:$4 sm:$0xff]  }
  0x54   :  { %732 = vmatprep.subr.bf16.mxu1 %v1513_v20  ;;  %v1525_v26 = vld [vmem:[#allocation5 + $0x34] ss:$8 sps:$4 sm:$0xff]   ;;  %v1479_v27 = vld [vmem:[#allocation5 + $0x190] ss:$8 sps:$4 sm:$0xff]   ;;  %v1480_v28 = vld [vmem:[#allocation5 + $0x1a4] ss:$8 sps:$4 sm:$0xff]  }
  0x55   :  { %778 = vmatpush1.bf16.msra.mxu0 %v1458_v5  ;;  %v1530_v29 = vld [vmem:[#allocation5 + $0x30] ss:$8 sps:$4 sm:$0xff]   ;;  %v1531_v30 = vld [vmem:[#allocation5 + $0x44] ss:$8 sps:$4 sm:$0xff]   ;;  %v1482_v31 = vld [vmem:[#allocation5 + $0x1a0] ss:$8 sps:$4 sm:$0xff]  }
  0x56   :  { %779 = vmatprep.subr.bf16.mxu0 %v1459_v6  ;;  %v1483_v32 = vld [vmem:[#allocation5 + $0x1b4] ss:$8 sps:$4 sm:$0xff]   ;;  %v1536_v33 = vld [vmem:[#allocation5 + $0x40] ss:$8 sps:$4 sm:$0xff]   ;;  %v1485_v35 = vld [vmem:[#allocation5 + $0x1b0] ss:$8 sps:$4 sm:$0xff]  }
  0x57   :  { %733 = vmatpush1.bf16.msra.mxu1 %v1518_v22  ;;  %v1537_v34 = vld [vmem:[#allocation5 + $0x54] ss:$8 sps:$4 sm:$0xff]   ;;  %v1486_v36 = vld [vmem:[#allocation5 + $0x1c4] ss:$8 sps:$4 sm:$0xff]   ;;  %v1542_v37 = vld [vmem:[#allocation5 + $0x50] ss:$8 sps:$4 sm:$0xff]  }
  0x58   :  { %734 = vmatprep.subr.bf16.mxu1 %v1519_v23  ;;  %v1543_v38 = vld [vmem:[#allocation5 + $0x64] ss:$8 sps:$4 sm:$0xff]   ;;  %v1488_v39 = vld [vmem:[#allocation5 + $0x1c0] ss:$8 sps:$4 sm:$0xff]   ;;  %v1489_v40 = vld [vmem:[#allocation5 + $0x1d4] ss:$8 sps:$4 sm:$0xff]  }
  0x59   :  { %780 = vmatpush1.bf16.msra.mxu0 %v1461_v7  ;;  %v1548_v41 = vld [vmem:[#allocation5 + $0x60] ss:$8 sps:$4 sm:$0xff]   ;;  %v1549_v42 = vld [vmem:[#allocation5 + $0x74] ss:$8 sps:$4 sm:$0xff]   ;;  %v1491_v43 = vld [vmem:[#allocation5 + $0x1d0] ss:$8 sps:$4 sm:$0xff]  }
  0x5a   :  { %781 = vmatprep.subr.bf16.mxu0 %v1462_v8  ;;  %v1492_v44 = vld [vmem:[#allocation5 + $0x1e4] ss:$8 sps:$4 sm:$0xff]   ;;  %v1554_v45 = vld [vmem:[#allocation5 + $0x70] ss:$8 sps:$4 sm:$0xff]   ;;  %v1494_v47 = vld [vmem:[#allocation5 + $0x1e0] ss:$8 sps:$4 sm:$0xff]  }
  0x5b   :  { %735 = vmatpush1.bf16.msra.mxu1 %v1524_v25  ;;  %v1555_v46 = vld [vmem:[#allocation5 + $0x84] ss:$8 sps:$4 sm:$0xff]   ;;  %v1495_v48 = vld [vmem:[#allocation5 + $0x1f4] ss:$8 sps:$4 sm:$0xff]   ;;  %v1560_v49 = vld [vmem:[#allocation5 + $0x80] ss:$8 sps:$4 sm:$0xff]  }
  0x5c   :  { %736 = vmatprep.subr.bf16.mxu1 %v1525_v26  ;;  %v1561_v50 = vld [vmem:[#allocation5 + $0x94] ss:$8 sps:$4 sm:$0xff]   ;;  %v1497_v51 = vld [vmem:[#allocation5 + $0x1f0] ss:$8 sps:$4 sm:$0xff]   ;;  %v1503_v52 = vld [vmem:[#allocation5 + $0x204] ss:$8 sps:$4 sm:$0xff]  }
  0x5d   :  { %782 = vmatpush1.bf16.msra.mxu0 %v1464_v9  ;;  %v1566_v53 = vld [vmem:[#allocation5 + $0x90] ss:$8 sps:$4 sm:$0xff]   ;;  %v1567_v55 = vld [vmem:[#allocation5 + $0xa4] ss:$8 sps:$4 sm:$0xff]   ;;  %v1501_v56 = vld [vmem:[#allocation5 + $0x200] ss:$8 sps:$4 sm:$0xff]  }
  0x5e   :  { %783 = vmatprep.subr.bf16.mxu0 %v1465_v10  ;;  %v1498_v54 = vld [vmem:[#allocation2 + $0x8] ss:$28 sps:$4 sm:$0xff]   ;;  %v1593_v57 = vld [vmem:[#allocation2 + $0x14] ss:$28 sps:$4 sm:$0xff]   ;;  %v1572_v59 = vld [vmem:[#allocation5 + $0xa0] ss:$8 sps:$4 sm:$0xff]  }
  0x5f   :  { %737 = vmatpush1.bf16.msra.mxu1 %v1530_v29  ;;  %v1506_v58 = vld [vmem:[#allocation5 + $0x214] ss:$8 sps:$4 sm:$0xff]   ;;  %v1504_v61 = vld [vmem:[#allocation5 + $0x210] ss:$8 sps:$4 sm:$0xff]   ;;  %v1511_v62 = vld [vmem:[#allocation5 + $0x224] ss:$8 sps:$4 sm:$0xff]  }
  0x60   :  { %738 = vmatprep.subr.bf16.mxu1 %v1531_v30  ;;  %v1573_v60 = vld [vmem:[#allocation5 + $0xb4] ss:$8 sps:$4 sm:$0xff]   ;;  %v1578_v63 = vld [vmem:[#allocation5 + $0xb0] ss:$8 sps:$4 sm:$0xff]   ;;  %v1605_v0 = vld [vmem:[#allocation2 + $0x4] ss:$28 sps:$4 sm:$0xff]  }
  0x61   :  { %784 = vmatpush1.bf16.msra.mxu0 %v1467_v11  ;;  %v1579_v1 = vld [vmem:[#allocation5 + $0xc4] ss:$8 sps:$4 sm:$0xff]   ;;  %v1509_v2 = vld [vmem:[#allocation5 + $0x220] ss:$8 sps:$4 sm:$0xff]   ;;  %762 = vmatprep.mubr.bf16.mxu1 %v1605_v0  ;;  %v1517_v3 = vld [vmem:[#allocation5 + $0x234] ss:$8 sps:$4 sm:$0xff]  }
  0x62   :  { %785 = vmatprep.subr.bf16.mxu0 %v1468_v12  ;;  %v1584_v4 = vld [vmem:[#allocation5 + $0xc0] ss:$8 sps:$4 sm:$0xff]   ;;  %v1585_v5 = vld [vmem:[#allocation5 + $0xd4] ss:$8 sps:$4 sm:$0xff]   ;;  %v1515_v6 = vld [vmem:[#allocation5 + $0x230] ss:$8 sps:$4 sm:$0xff]  }
  0x63   :  { %739 = vmatpush1.bf16.msra.mxu1 %v1536_v33  ;;  %v1523_v7 = vld [vmem:[#allocation5 + $0x244] ss:$8 sps:$4 sm:$0xff]   ;;  %v1521_v8 = vld [vmem:[#allocation5 + $0x240] ss:$8 sps:$4 sm:$0xff]   ;;  %v1590_v9 = vld [vmem:[#allocation5 + $0xd0] ss:$8 sps:$4 sm:$0xff]  }
  0x64   :  { %740 = vmatprep.subr.bf16.mxu1 %v1537_v34  ;;  %v1594_v10 = vld [vmem:[#allocation5 + $0xe4] ss:$8 sps:$4 sm:$0xff]   ;;  %v1529_v11 = vld [vmem:[#allocation5 + $0x254] ss:$8 sps:$4 sm:$0xff]   ;;  %v1599_v12 = vld [vmem:[#allocation5 + $0xe0] ss:$8 sps:$4 sm:$0xff]  }
  0x65   :  { %786 = vmatpush1.bf16.msra.mxu0 %v1470_v14  ;;  %v1600_v13 = vld [vmem:[#allocation5 + $0xf4] ss:$8 sps:$4 sm:$0xff]   ;;  %v1527_v14 = vld [vmem:[#allocation5 + $0x250] ss:$8 sps:$4 sm:$0xff]   ;;  %v1603_v20 = vld [vmem:[#allocation2] ss:$28 sps:$4 sm:$0xff]  }
  0x66   :  { %787 = vmatprep.subr.bf16.mxu0 %v1471_v15  ;;  %v1535_v15 = vld [vmem:[#allocation5 + $0x264] ss:$8 sps:$4 sm:$0xff]   ;;  %v1602_v16 = vld [vmem:[#allocation5 + $0xf0] ss:$8 sps:$4 sm:$0xff]   ;;  %v1541_v19 = vld [vmem:[#allocation5 + $0x274] ss:$8 sps:$4 sm:$0xff]  }
  0x67   :  { %741 = vmatpush1.bf16.msra.mxu1 %v1542_v37  ;;  %v1609_v22 = vld [vmem:[#allocation7 + $0x48] sm:$0xff]   ;;  %v1611_v26 = vld [vmem:[#allocation7 + $0x50] sm:$0xff]   ;;  %v1613_v30 = vld [vmem:[#allocation7 + $0x58] sm:$0xff]   ;;  %vm726_vm0 = vcmask 130048   ;;  %vm1761_vm1 = vmmov 0   ;;  %s1762_s9 = smov [#allocation10]  }
  0x68   :  { %742 = vmatprep.subr.bf16.mxu1 %v1543_v38  ;;  %v1539_v23 = vld [vmem:[#allocation5 + $0x270] ss:$8 sps:$4 sm:$0xff]   ;;  %v1612_v29 = vld [vmem:[#allocation7 + $0x10] sm:$0xff]   ;;  %v1614_v33 = vld [vmem:[#allocation7 + $0x18] sm:$0xff]  }
  0x69   :  { %788 = vmatpush1.bf16.msra.mxu0 %v1473_v17  ;;  %v1607_v17 = vld [vmem:[#allocation7 + $0x40] sm:$0xff]   ;;  %v1610_v25 = vld [vmem:[#allocation7 + $0x8] sm:$0xff]   ;;  %v1571_v38 = vld [vmem:[#allocation5 + $0x2c4] ss:$8 sps:$4 sm:$0xff]  }
  0x6a   :  { %789 = vmatprep.subr.bf16.mxu0 %v1474_v18  ;;  %v1533_v18 = vld [vmem:[#allocation5 + $0x260] ss:$8 sps:$4 sm:$0xff]   ;;  %v1615_v34 = vld [vmem:[#allocation7 + $0x60] sm:$0xff]  }
  0x6b   :  { %743 = vmatpush1.bf16.msra.mxu1 %v1548_v41  ;;  %v1563_v37 = vld [vmem:[#allocation5 + $0x2b0] ss:$8 sps:$4 sm:$0xff]  }
  0x6c   :  { %744 = vmatprep.subr.bf16.mxu1 %v1549_v42  ;;  %v1575_v41 = vld [vmem:[#allocation5 + $0x2d0] ss:$8 sps:$4 sm:$0xff]   ;;  %v1583_v42 = vld [vmem:[#allocation5 + $0x2e4] ss:$8 sps:$4 sm:$0xff]  }
  0x6d   :  { %790 = vmatpush1.bf16.msra.mxu0 %v1476_v21  ;;  %v1608_v21 = vld [vmem:[#allocation7] sm:$0xff]  }
  0x6e   :  { %791 = vmatprep.subr.bf16.mxu0 %v1477_v24  ;;  %v1547_v24 = vld [vmem:[#allocation5 + $0x284] ss:$8 sps:$4 sm:$0xff]  }
  0x6f   :  { %745 = vmatpush1.bf16.msra.mxu1 %v1554_v45  ;;  %v1587_v45 = vld [vmem:[#allocation5 + $0x2f0] ss:$8 sps:$4 sm:$0xff]  }
  0x70   :  { %746 = vmatprep.subr.bf16.mxu1 %v1555_v46  ;;  %v1598_v46 = vld [vmem:[#allocation5 + $0x304] ss:$8 sps:$4 sm:$0xff]  }
  0x71   :  { %792 = vmatpush1.bf16.msra.mxu0 %v1479_v27  ;;  %v1545_v27 = vld [vmem:[#allocation5 + $0x280] ss:$8 sps:$4 sm:$0xff]  }
  0x72   :  { %793 = vmatprep.subr.bf16.mxu0 %v1480_v28  ;;  %v1553_v28 = vld [vmem:[#allocation5 + $0x294] ss:$8 sps:$4 sm:$0xff]  }
  0x73   :  { %747 = vmatpush1.bf16.msra.mxu1 %v1560_v49  ;;  %v1759_v49 = vmov 0  }
  0x74   :  { %748 = vmatprep.subr.bf16.mxu1 %v1561_v50  ;;  %v1606_v50 = vld [vmem:[#allocation2 + $0x18] ss:$28 sps:$4 sm:$0xff]  }
  0x75   :  { %794 = vmatpush1.bf16.msra.mxu0 %v1482_v31  ;;  %v1551_v31 = vld [vmem:[#allocation5 + $0x290] ss:$8 sps:$4 sm:$0xff]  }
  0x76   :  { %795 = vmatprep.subr.bf16.mxu0 %v1483_v32  ;;  %v1559_v32 = vld [vmem:[#allocation5 + $0x2a4] ss:$8 sps:$4 sm:$0xff]  }
  0x77   :  { %749 = vmatpush1.bf16.msra.mxu1 %v1566_v53  ;;  %v1618_v53 = vld [vmem:[#allocation7 + $0x28] sm:$0xff]  }
  0x78   :  { %750 = vmatprep.subr.bf16.mxu1 %v1567_v55  ;;  %v1620_v55 = vld [vmem:[#allocation7 + $0x30] sm:$0xff]  }
  0x79   :  { %796 = vmatpush1.bf16.msra.mxu0 %v1485_v35  ;;  %v1557_v35 = vld [vmem:[#allocation5 + $0x2a0] ss:$8 sps:$4 sm:$0xff]  }
  0x7a   :  { %797 = vmatprep.subr.bf16.mxu0 %v1486_v36  ;;  %v1565_v36 = vld [vmem:[#allocation5 + $0x2b4] ss:$8 sps:$4 sm:$0xff]  }
  0x7b   :  { %751 = vmatpush1.bf16.msra.mxu1 %v1572_v59 }
  0x7c   :  { %752 = vmatprep.subr.bf16.mxu1 %v1573_v60 }
  0x7d   :  { %798 = vmatpush1.bf16.msra.mxu0 %v1488_v39  ;;  %v1569_v39 = vld [vmem:[#allocation5 + $0x2c0] ss:$8 sps:$4 sm:$0xff]  }
  0x7e   :  { %799 = vmatprep.subr.bf16.mxu0 %v1489_v40  ;;  %v1577_v40 = vld [vmem:[#allocation5 + $0x2d4] ss:$8 sps:$4 sm:$0xff]  }
  0x7f   :  { %753 = vmatpush1.bf16.msra.mxu1 %v1578_v63  ;;  %v191_v63 = vlaneseq }
  0x80   :  { %754 = vmatprep.subr.bf16.mxu1 %v1579_v1 }
  0x81   :  { %800 = vmatpush1.bf16.msra.mxu0 %v1491_v43  ;;  %v1581_v43 = vld [vmem:[#allocation5 + $0x2e0] ss:$8 sps:$4 sm:$0xff]   ;;  %v192_v0 = vshrl.u32 %v191_v63, 7 }
  0x82   :  { %801 = vmatprep.subr.bf16.mxu0 %v1492_v44  ;;  %v1589_v44 = vld [vmem:[#allocation5 + $0x2f4] ss:$8 sps:$4 sm:$0xff]  }
  0x83   :  { %755 = vmatpush1.bf16.msra.mxu1 %v1584_v4  ;;  %v193_v1 = vsub.s32 0, %v192_v0 }
  0x84   :  { %756 = vmatprep.subr.bf16.mxu1 %v1585_v5 }
  0x85   :  { %802 = vmatpush1.bf16.msra.mxu0 %v1494_v47  ;;  %v1591_v47 = vld [vmem:[#allocation2 + $0x10] ss:$28 sps:$4 sm:$0xff]  }
  0x86   :  { %803 = vmatprep.subr.bf16.mxu0 %v1495_v48  ;;  %v1596_v48 = vld [vmem:[#allocation5 + $0x300] ss:$8 sps:$4 sm:$0xff]  }
  0x87   :  { %757 = vmatpush1.bf16.msra.mxu1 %v1590_v9 }
  0x88   :  { %758 = vmatprep.subr.bf16.mxu1 %v1594_v10 }
  0x89   :  { %804 = vmatpush1.bf16.msra.mxu0 %v1497_v51  ;;  %v1616_v51 = vld [vmem:[#allocation7 + $0x20] sm:$0xff]  }
  0x8a   :  { %816 = vmatprep.subr.bf16.mxu0 %v1503_v52  ;;  %v1617_v52 = vld [vmem:[#allocation7 + $0x68] sm:$0xff]  }
  0x8b   :  { %759 = vmatpush1.bf16.msra.mxu1 %v1599_v12 }
  0x8c   :  { %806 = vmatmul.mubr.bf16.vlgmr.msra.gmra.mrb[0].mxu0 %v1498_v54  ;;  %760 = vmatprep.subr.bf16.mxu1 %v1600_v13  ;;  %v1619_v54 = vld [vmem:[#allocation7 + $0x70] sm:$0xff]  }
  0x8d   :  { %817 = vmatpush1.bf16.msra.mxu0 %v1501_v56  ;;  %848 = vmatprep.mubr.bf16.mxu0 %v1593_v57  ;;  %v1621_v56 = vld [vmem:[#allocation7 + $0x78] sm:$0xff]  }
  0x8e   :  { %818 = vmatprep.subr.bf16.mxu0 %v1506_v58  ;;  %v1622_v57 = vld [vmem:[#allocation7 + $0x38] sm:$0xff]   ;;  %v1760_v58 = vmov 0.0  }
  0x8f   :  { %761 = vmatpush1.bf16.msra.mxu1 %v1602_v16 }
  0x90   :  { %1369 = vmatprep.subr.bf16.mxu1 %v1607_v17 }
  0x91   :  { %819 = vmatpush1.bf16.msra.mxu0 %v1504_v61 }
  0x92   :  { %820 = vmatprep.subr.bf16.mxu0 %v1511_v62  ;;  %763 = vmatmul.mubr.bf16.vlgmr.msra.gmra.mrb[0].mxu1 %v1603_v20 }
  0x93   :  { %1370 = vmatpush3.bf16.msra.mxu1 %v1608_v21 }
  0x94   :  { %1371 = vmatprep.subr.bf16.mxu1 %v1609_v22 }
  0x95   :  { %821 = vmatpush1.bf16.msra.mxu0 %v1509_v2  ;;  %v189_v2 = vld [vmem:[%s1883_s2] sm:$0x3] }
  0x96   :  { %822 = vmatprep.subr.bf16.mxu0 %v1517_v3  ;;  %v197_v3 = vsub.s32 1, %v192_v0  ;;  %v194_v4 = vrot.slane %v189_v2, %v193_v1 }
  0x97   :  { %1372 = vmatpush3.bf16.msra.mxu1 %v1610_v25  ;;  %v1624_v25 = vld [vmem:[#allocation8 + $0x8] sm:$0xff]  }
  0x98   :  { %1373 = vmatprep.subr.bf16.mxu1 %v1611_v26  ;;  %v198_v5 = vrot.slane %v189_v2, %v197_v3  ;;  %v1625_v26 = vld [vmem:[#allocation8 + $0x10] sm:$0xff]  }
  0x99   :  { %823 = vmatpush1.bf16.msra.mxu0 %v1515_v6 }
  0x9a   :  { %824 = vmatprep.subr.bf16.mxu0 %v1523_v7 }
  0x9b   :  { %1374 = vmatpush3.bf16.msra.mxu1 %v1612_v29  ;;  %v1628_v29 = vld [vmem:[#allocation8 + $0x28] sm:$0xff]  }
  0x9c   :  { %1375 = vmatprep.subr.bf16.mxu1 %v1613_v30  ;;  %v1629_v30 = vld [vmem:[#allocation8 + $0x30] sm:$0xff]  }
  0x9d   :  { %825 = vmatpush1.bf16.msra.mxu0 %v1521_v8 }
  0x9e   :  { %826 = vmatprep.subr.bf16.mxu0 %v1529_v11 }
  0x9f   :  { %1376 = vmatpush3.bf16.msra.mxu1 %v1614_v33  ;;  %v1334_v33 = vld [vmem:[%s1885_s4] ss:$0 sm:$0xff]  ;;  %s1214_s4 = sshll.u32 %s1762_s9, 4  ;;  %s1215_s4 = int_to_ptr.vmem [resolvable:$true] %s1214_s4 }
  0xa0   :  { %1377 = vmatprep.subr.bf16.mxu1 %v1615_v34  ;;  %s1719_s10 = scalar_lea.vmem %s1215_s4, 128  ;;  %p1724_p5 = scmp.lt.s32.totalorder %s1215_s4, %s1215_s4 }
  0xa1   :  { %827 = vmatpush1.bf16.msra.mxu0 %v1527_v14  ;;  %p1720_p4 = scmp.ne.s32.totalorder %s1215_s4, %s1719_s10  ;;  %p1725_p6 = scmp.lt.s32.totalorder %s1719_s10, %s1719_s10 }
  0xa2   :  { %828 = vmatprep.subr.bf16.mxu0 %v1535_v15 }
  0xa3   :  { %1378 = vmatpush3.bf16.msra.mxu1 %v1616_v51  ;;  %p1726_p7 = por %p1725_p6, %p1724_p5 }
  0xa4   :  { %1379 = vmatprep.subr.bf16.mxu1 %v1617_v52 }
  0xa5   :  { %829 = vmatpush1.bf16.msra.mxu0 %v1533_v18  ;;  %p1727_p8 = pnand %p1726_p7, %p1720_p4 }
  0xa6   :  { %830 = vmatprep.subr.bf16.mxu0 %v1541_v19 }
  0xa7   :  { %1380 = vmatpush3.bf16.msra.mxu1 %v1618_v53 }
  0xa8   :  { %1381 = vmatprep.subr.bf16.mxu1 %v1619_v54 }
  0xa9   :  { %831 = vmatpush1.bf16.msra.mxu0 %v1539_v23 }
  0xaa   :  { %832 = vmatprep.subr.bf16.mxu0 %v1547_v24  ;;  %v1623_v24 = vld [vmem:[#allocation8] sm:$0xff]  }
  0xab   :  { %1382 = vmatpush3.bf16.msra.mxu1 %v1620_v55 }
  0xac   :  { %1383 = vmatprep.subr.bf16.mxu1 %v1621_v56 }
  0xad   :  { %833 = vmatpush1.bf16.msra.mxu0 %v1545_v27  ;;  %v1626_v27 = vld [vmem:[#allocation8 + $0x18] sm:$0xff]  }
  0xae   :  { %834 = vmatprep.subr.bf16.mxu0 %v1553_v28  ;;  %v1627_v28 = vld [vmem:[#allocation8 + $0x20] sm:$0xff]  }
  0xaf   :  { %1384 = vmatpush3.bf16.msra.mxu1 %v1622_v57 }
  0xb0   :  { %1400 = vmatprep.subr.bf16.mxu1 %v1760_v58 }
  0xb1   :  { %835 = vmatpush1.bf16.msra.mxu0 %v1551_v31  ;;  %v1630_v31 = vld [vmem:[#allocation8 + $0x38] sm:$0xff]  }
  0xb2   :  { %836 = vmatprep.subr.bf16.mxu0 %v1559_v32 }
  0xb5   :  { %837 = vmatpush1.bf16.msra.mxu0 %v1557_v35 }
  0xb6   :  { %838 = vmatprep.subr.bf16.mxu0 %v1565_v36 }
  0xb9   :  { %839 = vmatpush1.bf16.msra.mxu0 %v1563_v37 }
  0xba   :  { %840 = vmatprep.subr.bf16.mxu0 %v1571_v38 }
  0xbd   :  { %841 = vmatpush1.bf16.msra.mxu0 %v1569_v39 }
  0xbe   :  { %842 = vmatprep.subr.bf16.mxu0 %v1577_v40 }
  0xc1   :  { %843 = vmatpush1.bf16.msra.mxu0 %v1575_v41 }
  0xc2   :  { %844 = vmatprep.subr.bf16.mxu0 %v1583_v42 }
  0xc5   :  { %845 = vmatpush1.bf16.msra.mxu0 %v1581_v43 }
  0xc6   :  { %846 = vmatprep.subr.bf16.mxu0 %v1589_v44  ;;  %v1351_v44 = vld [vmem:[%s1887_s6] ss:$0 sm:$0xff] }
  0xc9   :  { %847 = vmatpush1.bf16.msra.mxu0 %v1587_v45 }
  0xca   :  { %859 = vmatprep.subr.bf16.mxu0 %v1598_v46 }
  0xcc   :  { %849 = vmatmul.mubr.bf16.vlgmr.msra.gmra.mrb[0].mxu0 %v1591_v47 }
  0xcd   :  { %860 = vmatpush1.bf16.msra.mxu0 %v1596_v48  ;;  %891 = vmatprep.mubr.bf16.mxu0 %v1759_v49 }
  0xd8   :  { %1333 = vmatmul.mubr.msk.bf16.vlgmr.msra.gmra.mrb[0].mxu0 %vm726_vm0, %v1606_v50 }
 0x165   :  { %v764_v59 = vpop.f32.mrb[0].mxu1 }
 0x166   :  { %v766_v60 = vpop.f32.mrb[1].mxu1  ;;  %v765_v6 = vadd.f32 %v764_v59, %v194_v4 }
 0x167   :  { %v768_v61 = vpop.f32.mrb[2].mxu1  ;;  %v767_v7 = vadd.f32 %v766_v60, %v198_v5 }
 0x168   :  { %v770_v62 = vpop.f32.mrb[3].mxu1  ;;  %v769_v9 = vadd.f32 %v768_v61, %v194_v4 }
 0x169   :  { %v771_v12 = vadd.f32 %v770_v62, %v198_v5 }
 0x1ab   :  { %v893_v8 = vpop.f32.mrb[0].mxu0 }
 0x1ac   :  { %v1421_v10 = vadd.f32 %v893_v8, %v765_v6  ;;  %v895_v11 = vpop.f32.mrb[1].mxu0 }
 0x1ad   :  { %v1423_v13 = vadd.f32 %v895_v11, %v767_v7  ;;  %v897_v14 = vpop.f32.mrb[2].mxu0 }
 0x1ae   :  { %v1425_v15 = vadd.f32 %v897_v14, %v769_v9  ;;  %v899_v16 = vpop.f32.mrb[3].mxu0  ;;  %v902_v18 = vmax.f32 %v1421_v10, 0.0 }
 0x1af   :  { %v1427_v17 = vadd.f32 %v899_v16, %v771_v12  ;;  %v903_v20 = vmax.f32 %v1423_v13, 0.0 }
 0x1b0   :  { %v904_v19 = vmax.f32 %v1425_v15, 0.0 }
 0x1b1   :  { %v905_v21 = vmax.f32 %v1427_v17, 0.0 }
 0x1b2   :  { %v906_v22 = vpack.c.bf16 %v904_v19, %v902_v18 }
 0x1b3   :  { %v907_v23 = vpack.c.bf16 %v905_v21, %v903_v20 }
 0x1b5   :  { %1075 = vmatprep.mubr.bf16.mxu1 %v907_v23 }
 0x1b6   :  { %1076 = vmatmul.mubr.bf16.vlgmr.msra.gmra.mrb[4].mxu1 %v906_v22 }
 0x1b7   :  { %1401 = vmatpush3.bf16.msra.mxu1 %v1623_v24  ;;  %1416 = vmatprep.mubr.msk.bf16.mxu1 %vm1761_vm1, %v1760_v58 }
 0x1b8   :  { %1402 = vmatprep.subr.bf16.mxu1 %v1760_v58 }
 0x1bb   :  { %1403 = vmatpush3.bf16.msra.mxu1 %v1624_v25 }
 0x1bc   :  { %1404 = vmatprep.subr.bf16.mxu1 %v1760_v58 }
 0x1bf   :  { %1405 = vmatpush3.bf16.msra.mxu1 %v1625_v26 }
 0x1c0   :  { %1406 = vmatprep.subr.bf16.mxu1 %v1760_v58 }
 0x1c3   :  { %1407 = vmatpush3.bf16.msra.mxu1 %v1626_v27 }
 0x1c4   :  { %1408 = vmatprep.subr.bf16.mxu1 %v1760_v58 }
 0x1c7   :  { %1409 = vmatpush3.bf16.msra.mxu1 %v1627_v28 }
 0x1c8   :  { %1410 = vmatprep.subr.bf16.mxu1 %v1760_v58 }
 0x1cb   :  { %1411 = vmatpush3.bf16.msra.mxu1 %v1628_v29 }
 0x1cc   :  { %1412 = vmatprep.subr.bf16.mxu1 %v1760_v58 }
 0x1cf   :  { %1413 = vmatpush3.bf16.msra.mxu1 %v1629_v30 }
 0x1d0   :  { %1414 = vmatprep.subr.bf16.mxu1 %v1760_v58 }
 0x1d3   :  { %1415 = vmatpush3.bf16.msra.mxu1 %v1630_v31 }
 0x289   :  { %v1385_v32 = vpop.f32.mrb[4].mxu1 }
 0x28a   :  { %v1386_v34 = vpop.f32.mrb[5].mxu1 }
 0x28b   :  { %v1387_v35 = vadd.f32 %v1386_v34, %v1385_v32  ;;  %v1388_v36 = vpop.f32.mrb[6].mxu1 }
 0x28c   :  { %v1389_v37 = vpop.f32.mrb[7].mxu1 }
 0x28d   :  { %v1078_v38 = vadd.f32 %v1387_v35, %v1334_v33  ;;  %v1390_v39 = vadd.f32 %v1389_v37, %v1388_v36 }
 0x28f   :  { %v1081_v40 = vadd.f32 %v1390_v39, %v1334_v33  ;;  %v1084_v41 = vmax.f32 %v1078_v38, 0.0 }
 0x291   :  { %v1085_v42 = vmax.f32 %v1081_v40, 0.0 }
 0x293   :  { %v1086_v43 = vpack.c.bf16 %v1085_v42, %v1084_v41 }
 0x295   :  { %1417 = vmatmul.mubr.bf16.vlgmr.msra.gmra.mrb[8].mxu1 %v1086_v43 }
 0x368   :  { %v1192_v45 = vpop.f32.mrb[8].mxu1 }
 0x369   :  { %v1418_v46 = vpop.f32.mrb[9].mxu1  ;;  %v1193_v48 = vadd.f32 %v1351_v44, %v1192_v45 }
 0x36a   :  { %v1195_v47 = vpop.f32.mrb[10].mxu1 }
 0x36b   :  { %v1196_v49 = vadd.f32 %v1351_v44, %v1195_v47  ;;  %v1419_v50 = vpop.f32.mrb[11].mxu1 }
 0x36d   :  { %v1367_v51 = vpack.c.bf16 %v1196_v49, %v1193_v48 }
 0x36f   :  { %1368 = vst [vmem:[#allocation10] sm:$0xff] %v1367_v51  }
 0x370   :  { %1730 = shalt.err (!%p1727_p8)
}
 0x371   :  { %s1731_s12 = scalar_lea.hbm %s1888_s7, 128 }
 0x372   :  { %p1732_p9 = scmp.ne.s32.totalorder %s1888_s7, %s1731_s12  ;;  %p1735_p10 = scmp.lt.u32.totalorder %s1731_s12, %s1888_s7 }
 0x374   :  { %p1737_p11 = pnand %p1735_p10, %p1732_p9 }
 0x376   :  { %1740 = shalt.err (!%p1737_p11)
}
 0x377   :  { %1220 = dma.vmem_to_hbm [thread:$0]  %s1215_s4, 128, %s1888_s7, [#allocation4], %s1756_s0, %s1756_s0, %s1757_s15  }
 0x378   :  { %1747 = dma.done.wait [#allocation4], 128  }
 0x379   :  { %1748 = vsyncadd [#allocation4], 4294967168 }
 0x37a   :  { %1224 = vsyncpa [#allocation3], 1 }
 0x37b   :  { %1225 = vsyncpa [#allocation6], 1 }
 0x37c   :  { %1226 = vsyncpa [#allocation9], 1 }
 0x37d   :  { %1227 = vsyncpa [#allocation4], 1 }

</bundles_post_ra>
